<compile_context>
chip_gen: v5e
topology: v5e:2x2
jax: 0.10.0
libtpu: 0.0.40
codegen_flags: <defaults>
</compile_context>

<pallas_src>
import jax
import jax.numpy as jnp
from jax.experimental import pallas as pl
from jax.experimental.pallas import tpu as pltpu


def _relu6(x):
    return jnp.clip(x, 0.0, 6.0)


def discriminator_kernel(x_ref, w1t_ref, b1_ref, w2t_ref, b2_ref, w3_ref,
                         b3_ref, o_ref):
    """One (tm, in_dim) batch tile -> (1, 1, tm) lane-dense probabilities."""
    f32 = jnp.float32
    mm = w1t_ref.dtype                       # matmul operand dtype (bf16)

    # Transpose the x tile once: (tm, in) -> (in, tm).  Done in f32 (the most
    # robust transpose path on all generations), then cast to bf16 for the
    # MXU.  Everything downstream keeps batch rows on the 128-lane axis.
    xt = jnp.transpose(x_ref[...].astype(f32)).astype(mm)         # (in, tm)

    # input_layer + relu6:   h1^T = W1^T @ x^T   -> (h, tm), f32 accumulation.
    h1t = jnp.dot(w1t_ref[...], xt, preferred_element_type=f32)
    h1t = _relu6(h1t + b1_ref[...])                               # (h,1) bcast

    # hidden_layer + relu6:  h2^T = W2^T @ h1^T  -> (h, tm).
    h2t = jnp.dot(w2t_ref[...], h1t.astype(mm), preferred_element_type=f32)
    h2t = _relu6(h2t + b2_ref[...])

    # output_layer: logits^T = w3_row @ h2^T     -> (8, tm), keep row 0.
    # w3 is a pre-broadcast (8, h) slab from the wrapper, so the MXU sees a
    # full sublane tile and there is no per-step broadcast_in_dim.
    lg = jnp.dot(w3_ref[...], h2t.astype(mm), preferred_element_type=f32)
    logit = lg[0:1, :] + b3_ref[0, 0]                             # SMEM scalar

    # sigmoid: exp and approximate reciprocal both run on the EUP slot.
    prob = pl.reciprocal(1.0 + jnp.exp(-logit), approx=True)
    o_ref[...] = prob.reshape(o_ref.shape).astype(o_ref.dtype)


def discriminator_forward(x, params, *, block_rows=8192,
                          storage_dtype=jnp.bfloat16):
    """x: (batch, input_dim) -> (batch, 1) float32 probabilities.

    block_rows: target batch rows per grid step.  8192 keeps per-step HBM
      traffic well above the ~0.35 us grid-step overhead on v5e/v6e/v7x while
      the double-buffered x tile + intermediates stay far under the 32 MiB
      scoped-VMEM default (add vmem_limit_bytes if you push past ~16K rows).
    storage_dtype: HBM dtype for x (default bf16, pass None to leave x as-is;
      ideally the producer already stores x in bf16 so no extra cast pass is
      needed).  Weights are always fed to the kernel in bf16; matmuls
      accumulate in f32 and all element-wise math is f32.
    """
    if block_rows < 128:
        raise ValueError("block_rows must be >= 128")
    w1, b1, w2, b2, w3, b3 = params
    batch, in_dim = x.shape
    h = w1.shape[1]

    mm_dtype = jnp.bfloat16
    if storage_dtype is not None:
        x = x.astype(storage_dtype)

    # Weights/biases are tiny and VMEM-resident (constant index_map): do all
    # layout prep (transpose, sublane pad, column reshape) once in the wrapper
    # so the kernel does zero per-step layout work on them.
    w1t = jnp.asarray(w1, dtype=mm_dtype).T                     # (h, in)
    w2t = jnp.asarray(w2, dtype=mm_dtype).T                     # (h, h)
    w3_slab = jnp.broadcast_to(
        jnp.asarray(w3, dtype=mm_dtype).reshape(1, h), (8, h))  # (8, h)
    b1c = jnp.asarray(b1, dtype=jnp.float32).reshape(h, 1)      # lane-bcast col
    b2c = jnp.asarray(b2, dtype=jnp.float32).reshape(h, 1)
    b3s = jnp.asarray(b3, dtype=jnp.float32).reshape(1, 1)      # SMEM scalar

    # ---- tile / grid selection ----------------------------------------------
    padded128 = 128 * pl.cdiv(batch, 128)                 # lane-aligned batch
    grid = pl.cdiv(padded128, min(block_rows, padded128))
    if grid == 1 and padded128 >= 256:
        grid = 2      # v7x: give both TensorCores work on the parallel axis
    tm = 128 * pl.cdiv(padded128 // 128, grid)             # balanced, 128-aligned
    grid = pl.cdiv(padded128, tm)
    padded = grid * tm
    if padded != batch:
        x = jnp.pad(x, ((0, padded - batch), (0, 0)))

    out_slab = pl.pallas_call(
        discriminator_kernel,
        out_shape=jax.ShapeDtypeStruct((grid, 1, tm), jnp.float32),
        grid=(grid,),
        in_specs=[
            # x is the only streamed operand (double-buffered by the BlockSpec
            # pipeline).  If profiling ever shows exposed DMA at large tm, add
            # pipeline_mode=pl.Buffered(3) here; the resident weight specs stay
            # at the default so they are fetched once.
            pl.BlockSpec((tm, in_dim), lambda i: (i, 0)),
            pl.BlockSpec((h, in_dim), lambda i: (0, 0)),        # W1^T resident
            pl.BlockSpec((h, 1), lambda i: (0, 0)),             # b1 column
            pl.BlockSpec((h, h), lambda i: (0, 0)),             # W2^T
            pl.BlockSpec((h, 1), lambda i: (0, 0)),             # b2 column
            pl.BlockSpec((8, h), lambda i: (0, 0)),             # w3 slab
            pl.BlockSpec((1, 1), lambda i: (0, 0),
                         memory_space=pltpu.SMEM),              # b3 scalar
        ],
        out_specs=pl.BlockSpec((1, 1, tm), lambda i: (i, 0, 0)),  # lane-dense
        compiler_params=pltpu.CompilerParams(
            dimension_semantics=("parallel",)),   # v7x: shard grid over 2 TCs
    )(x, w1t, b1c, w2t, b2c, w3_slab, b3s)

    return out_slab.reshape(padded, 1)[:batch]


def init_params(key, input_dim, h_size):
    """Deterministic synthetic parameters (PyTorch-Linear-like uniform init).

    Weights are stored as (in_features, out_features) so the math is
    x @ W + b, exactly matching nn.Linear's y = x W^T + b with W^T stored.
    """
    ks = jax.random.split(key, 6)

    def linear(kw, kb, fan_in, fan_out):
        bound = 1.0 / jnp.sqrt(fan_in)
        w = jax.random.uniform(kw, (fan_in, fan_out), jnp.float32, -bound, bound)
        b = jax.random.uniform(kb, (1, fan_out), jnp.float32, -bound, bound)
        return w, b

    w1, b1 = linear(ks[0], ks[1], input_dim, h_size)
    w2, b2 = linear(ks[2], ks[3], h_size, h_size)
    w3, b3 = linear(ks[4], ks[5], h_size, 1)
    return (w1, b1, w2, b2, w3, b3)


def reference_forward(x, params):
    """Pure-JAX reference mirroring the kernel's cast points (bf16 matmul
    operands, f32 accumulation, f32 element-wise math)."""
    w1, b1, w2, b2, w3, b3 = params
    bf, f32 = jnp.bfloat16, jnp.float32
    h1 = _relu6(jnp.dot(x.astype(bf), w1.astype(bf),
                        preferred_element_type=f32) + b1.astype(f32))
    h2 = _relu6(jnp.dot(h1.astype(bf), w2.astype(bf),
                        preferred_element_type=f32) + b2.astype(f32))
    logit = jnp.dot(h2.astype(bf), w3.astype(bf),
                    preferred_element_type=f32) + b3.astype(f32)
    return jax.nn.sigmoid(logit)


if __name__ == "__main__":
    input_dim, h_size = 16, 32
    key = jax.random.PRNGKey(0)
    kx, kx2, kp = jax.random.split(key, 3)
    params = init_params(kp, input_dim, h_size)

    # 1) Tiny batch (single grid step; rows padded 8 -> 128 internally),
    #    default bf16 storage for x.
    x_small = jax.random.normal(kx, (8, input_dim), jnp.float32)
    out_small = jax.block_until_ready(discriminator_forward(x_small, params))
    ref_small = reference_forward(x_small, params)
    assert out_small.shape == (8, 1)
    assert jnp.allclose(out_small, ref_small, atol=2e-3, rtol=2e-3), \
        "bf16-storage path mismatch vs JAX reference"

    # 2) Multi-tile grid (grid == 2, exercising the TC-split path) + batch
    #    padding + f32-storage override (matmul operands are still cast to
    #    bf16 in-kernel per the perf review).
    x_big = jax.random.normal(kx2, (300, input_dim), jnp.float32)
    out_big = jax.block_until_ready(
        discriminator_forward(x_big, params, storage_dtype=None))
    ref_big = reference_forward(x_big, params)
    assert out_big.shape == (300, 1)
    assert jnp.allclose(out_big, ref_big, atol=2e-3, rtol=2e-3), \
        "f32-storage path mismatch vs JAX reference"

    print("KERNEL_OK")
</pallas_src>

<mosaic_0001>
module attributes {stable_mosaic.version = 11 : i64} {
  func.func @discriminator_kernel(%arg0: i32, %arg1: memref<128x16xbf16, #tpu.memory_space<vmem>>, %arg2: memref<32x16xbf16, #tpu.memory_space<vmem>>, %arg3: memref<32x1xf32, #tpu.memory_space<vmem>>, %arg4: memref<32x32xbf16, #tpu.memory_space<vmem>>, %arg5: memref<32x1xf32, #tpu.memory_space<vmem>>, %arg6: memref<8x32xbf16, #tpu.memory_space<vmem>>, %arg7: memref<1x1xf32, #tpu.memory_space<smem>>, %arg8: memref<1x1x128xf32, #tpu.memory_space<vmem>>) attributes {dimension_semantics = [#tpu.dimension_semantics<parallel>], iteration_bounds = array<i64: 1>, scalar_prefetch = 0 : i64, scratch_operands = 0 : i64, tpu.core_type = #tpu.core_type<tc>, window_params = [{transform_indices = @transform_0, window_bounds = array<i64: 128, 16>}, {pipeline_mode = #tpu.pipeline_mode<synchronous>, transform_indices = @transform_1, window_bounds = array<i64: 32, 16>}, {pipeline_mode = #tpu.pipeline_mode<synchronous>, transform_indices = @transform_2, window_bounds = array<i64: 32, 1>}, {pipeline_mode = #tpu.pipeline_mode<synchronous>, transform_indices = @transform_3, window_bounds = array<i64: 32, 32>}, {pipeline_mode = #tpu.pipeline_mode<synchronous>, transform_indices = @transform_4, window_bounds = array<i64: 32, 1>}, {pipeline_mode = #tpu.pipeline_mode<synchronous>, transform_indices = @transform_5, window_bounds = array<i64: 8, 32>}, {transform_indices = @transform_6, window_bounds = array<i64: 1, 1>}, {transform_indices = @transform_7, window_bounds = array<i64: 1, 1, 128>}]} {
    %c0 = arith.constant 0 : index
    %c0_0 = arith.constant 0 : index
    %0 = vector.load %arg1[%c0, %c0_0] : memref<128x16xbf16, #tpu.memory_space<vmem>>, vector<128x16xbf16>
    %1 = arith.extf %0 : vector<128x16xbf16> to vector<128x16xf32>
    %2 = tpu.transpose %1, [1, 0] : vector<128x16xf32> -> vector<16x128xf32>
    %3 = arith.truncf %2 : vector<16x128xf32> to vector<16x128xbf16>
    %c0_1 = arith.constant 0 : index
    %c0_2 = arith.constant 0 : index
    %4 = vector.load %arg2[%c0_1, %c0_2] : memref<32x16xbf16, #tpu.memory_space<vmem>>, vector<32x16xbf16>
    %cst = arith.constant dense<0.000000e+00> : vector<32x128xf32>
    %5 = tpu.matmul %4, %3, %cst {dimension_numbers = #tpu.dot_dimension_numbers<[1], [0], [0], [1], [0, 0, 1, 1], [], []>} : vector<32x16xbf16>, vector<16x128xbf16>, vector<32x128xf32> -> vector<32x128xf32>
    %c0_3 = arith.constant 0 : index
    %c0_4 = arith.constant 0 : index
    %6 = vector.load %arg3[%c0_3, %c0_4] : memref<32x1xf32, #tpu.memory_space<vmem>>, vector<32x1xf32>
    %7 = vector.broadcast %6 : vector<32x1xf32> to vector<32x128xf32>
    %8 = arith.addf %5, %7 : vector<32x128xf32>
    %cst_5 = arith.constant 0.000000e+00 : f32
    %cst_6 = arith.constant 6.000000e+00 : f32
    %9 = vector.broadcast %cst_5 : f32 to vector<32x128xf32>
    %10 = arith.maximumf %9, %8 : vector<32x128xf32>
    %11 = vector.broadcast %cst_6 : f32 to vector<32x128xf32>
    %12 = arith.minimumf %11, %10 : vector<32x128xf32>
    %c0_7 = arith.constant 0 : index
    %c0_8 = arith.constant 0 : index
    %13 = vector.load %arg4[%c0_7, %c0_8] : memref<32x32xbf16, #tpu.memory_space<vmem>>, vector<32x32xbf16>
    %14 = arith.truncf %12 : vector<32x128xf32> to vector<32x128xbf16>
    %cst_9 = arith.constant dense<0.000000e+00> : vector<32x128xf32>
    %15 = tpu.matmul %13, %14, %cst_9 {dimension_numbers = #tpu.dot_dimension_numbers<[1], [0], [0], [1], [0, 0, 1, 1], [], []>} : vector<32x32xbf16>, vector<32x128xbf16>, vector<32x128xf32> -> vector<32x128xf32>
    %c0_10 = arith.constant 0 : index
    %c0_11 = arith.constant 0 : index
    %16 = vector.load %arg5[%c0_10, %c0_11] : memref<32x1xf32, #tpu.memory_space<vmem>>, vector<32x1xf32>
    %17 = vector.broadcast %16 : vector<32x1xf32> to vector<32x128xf32>
    %18 = arith.addf %15, %17 : vector<32x128xf32>
    %cst_12 = arith.constant 0.000000e+00 : f32
    %cst_13 = arith.constant 6.000000e+00 : f32
    %19 = vector.broadcast %cst_12 : f32 to vector<32x128xf32>
    %20 = arith.maximumf %19, %18 : vector<32x128xf32>
    %21 = vector.broadcast %cst_13 : f32 to vector<32x128xf32>
    %22 = arith.minimumf %21, %20 : vector<32x128xf32>
    %c0_14 = arith.constant 0 : index
    %c0_15 = arith.constant 0 : index
    %23 = vector.load %arg6[%c0_14, %c0_15] : memref<8x32xbf16, #tpu.memory_space<vmem>>, vector<8x32xbf16>
    %24 = arith.truncf %22 : vector<32x128xf32> to vector<32x128xbf16>
    %cst_16 = arith.constant dense<0.000000e+00> : vector<8x128xf32>
    %25 = tpu.matmul %23, %24, %cst_16 {dimension_numbers = #tpu.dot_dimension_numbers<[1], [0], [0], [1], [0, 0, 1, 1], [], []>} : vector<8x32xbf16>, vector<32x128xbf16>, vector<8x128xf32> -> vector<8x128xf32>
    %26 = vector.extract_strided_slice %25 {offsets = [0, 0], sizes = [1, 128], strides = [1, 1]} : vector<8x128xf32> to vector<1x128xf32>
    %c0_17 = arith.constant 0 : index
    %c0_18 = arith.constant 0 : index
    %27 = memref.load %arg7[%c0_17, %c0_18] : memref<1x1xf32, #tpu.memory_space<smem>>
    %28 = vector.broadcast %27 : f32 to vector<1x128xf32>
    %29 = arith.addf %26, %28 : vector<1x128xf32>
    %cst_19 = arith.constant 0.000000e+00 : f32
    %30 = vector.broadcast %cst_19 : f32 to vector<1x128xf32>
    %31 = arith.subf %30, %29 : vector<1x128xf32>
    %32 = math.exp %31 : vector<1x128xf32>
    %cst_20 = arith.constant 1.000000e+00 : f32
    %33 = vector.broadcast %cst_20 : f32 to vector<1x128xf32>
    %34 = arith.addf %33, %32 : vector<1x128xf32>
    %35 = tpu.reciprocal %34 {approx = true} : vector<1x128xf32> -> vector<1x128xf32>
    %36 = vector.shape_cast %35 : vector<1x128xf32> to vector<1x1x128xf32>
    %c0_21 = arith.constant 0 : index
    %c0_22 = arith.constant 0 : index
    %c0_23 = arith.constant 0 : index
    %37 = vector.load %arg8[%c0_21, %c0_22, %c0_23] : memref<1x1x128xf32, #tpu.memory_space<vmem>>, vector<1x1x128xf32>
    tpu.vector_store %arg8[%c0_21, %c0_22, %c0_23], %36 {strides = array<i32>} : memref<1x1x128xf32, #tpu.memory_space<vmem>>, vector<1x1x128xf32>,
    return
  }
  func.func @transform_0(%arg0: i32) -> (i32, i32) {
    %c0_i32 = arith.constant 0 : i32
    %c0_i32_0 = arith.constant 0 : i32
    return %arg0, %c0_i32 : i32, i32
  }
  func.func @transform_1(%arg0: i32) -> (i32, i32) {
    %c0_i32 = arith.constant 0 : i32
    %c0_i32_0 = arith.constant 0 : i32
    %c0_i32_1 = arith.constant 0 : i32
    return %c0_i32, %c0_i32_0 : i32, i32
  }
  func.func @transform_2(%arg0: i32) -> (i32, i32) {
    %c0_i32 = arith.constant 0 : i32
    %c0_i32_0 = arith.constant 0 : i32
    %c0_i32_1 = arith.constant 0 : i32
    return %c0_i32, %c0_i32_0 : i32, i32
  }
  func.func @transform_3(%arg0: i32) -> (i32, i32) {
    %c0_i32 = arith.constant 0 : i32
    %c0_i32_0 = arith.constant 0 : i32
    %c0_i32_1 = arith.constant 0 : i32
    return %c0_i32, %c0_i32_0 : i32, i32
  }
  func.func @transform_4(%arg0: i32) -> (i32, i32) {
    %c0_i32 = arith.constant 0 : i32
    %c0_i32_0 = arith.constant 0 : i32
    %c0_i32_1 = arith.constant 0 : i32
    return %c0_i32, %c0_i32_0 : i32, i32
  }
  func.func @transform_5(%arg0: i32) -> (i32, i32) {
    %c0_i32 = arith.constant 0 : i32
    %c0_i32_0 = arith.constant 0 : i32
    %c0_i32_1 = arith.constant 0 : i32
    return %c0_i32, %c0_i32_0 : i32, i32
  }
  func.func @transform_6(%arg0: i32) -> (i32, i32) {
    %c0_i32 = arith.constant 0 : i32
    %c0_i32_0 = arith.constant 0 : i32
    %c0_i32_1 = arith.constant 0 : i32
    return %c0_i32, %c0_i32_0 : i32, i32
  }
  func.func @transform_7(%arg0: i32) -> (i32, i32, i32) {
    %c0_i32 = arith.constant 0 : i32
    %c0_i32_0 = arith.constant 0 : i32
    %c0_i32_1 = arith.constant 0 : i32
    return %arg0, %c0_i32, %c0_i32_0 : i32, i32, i32
  }
}

</mosaic_0001>

<bundles_post_ra>
// kernel: tpu_custom_call.1
= control target key start
LH: loop header
LB: loop body
LE: loop exit
PB: predicated region body
PF: predicated region fallthrough
CT: control target
= control target key end

     0   :  { %s499_s0 = inlined_call_operand.vmem [shape: bf16[128,16], index: 0, kind: input, shape index: {}]   ;;  %s500_s1 = inlined_call_operand.vmem [shape: bf16[32,16], index: 1, kind: input, shape index: {}]   ;;  %s501_s2 = inlined_call_operand.vmem [shape: f32[32,1], index: 2, kind: input, shape index: {}]   ;;  %s502_s3 = inlined_call_operand.vmem [shape: bf16[32,32], index: 3, kind: input, shape index: {}]   ;;  %s503_s4 = inlined_call_operand.vmem [shape: f32[32,1], index: 4, kind: input, shape index: {}]   ;;  %s504_s5 = inlined_call_operand.vmem [shape: bf16[8,32], index: 5, kind: input, shape index: {}]   ;;  %s505_s6 = inlined_call_operand.<no memory space> [shape: f32[1,1], index: 6, kind: input, shape index: {}]   ;;  %s506_s7 = inlined_call_operand.hbm [shape: f32[1,1,128], index: 7, kind: output, shape index: {}]  }
   0x1   :  { %v310_v0 = vld [vmem:[%s499_s0] sm:$0xff]  }
   0x2   :  { %v311_v1 = vunpack.c.l.bf16 %v310_v0 }
   0x3   :  { %13 = vsyncpa [#allocation4], 0  ;;  %v312_v2 = vunpack.c.h.bf16 %v310_v0  ;;  %v341_v3 = vld [vmem:[%s499_s0 + $0x8] sm:$0xff]   ;;  %v342_v6 = vld [vmem:[%s499_s0 + $0x10] sm:$0xff]   ;;  %v385_v25 = vmov 0   ;;  %vm132_vm0 = vcmask 130048  }
   0x4   :  { %61 = vxpose.xlu0.b32.start [1/16] (narrow) %v311_v1, 16  ;;  %v315_v4 = vunpack.c.l.bf16 %v341_v3  ;;  %v316_v5 = vunpack.c.h.bf16 %v341_v3  ;;  %v319_v7 = vunpack.c.l.bf16 %v342_v6  ;;  %v320_v8 = vunpack.c.h.bf16 %v342_v6  ;;  %v343_v9 = vld [vmem:[%s499_s0 + $0x18] sm:$0xff]   ;;  %v344_v12 = vld [vmem:[%s499_s0 + $0x20] sm:$0xff]   ;;  %v345_v15 = vld [vmem:[%s499_s0 + $0x28] sm:$0xff]   ;;  %352 = vset.pattern.permute.xlu1 %v385_v25  ;;  %s386_s17 = smov [#allocation3]  }
   0x5   :  { %v323_v10 = vunpack.c.l.bf16 %v343_v9  ;;  %v324_v11 = vunpack.c.h.bf16 %v343_v9  ;;  %v327_v13 = vunpack.c.l.bf16 %v344_v12  ;;  %v328_v14 = vunpack.c.h.bf16 %v344_v12  ;;  %v346_v18 = vld [vmem:[%s499_s0 + $0x30] sm:$0xff]   ;;  %v347_v21 = vld [vmem:[%s499_s0 + $0x38] sm:$0xff]   ;;  %353 = vset.pattern.permute.xlu2 %v385_v25  ;;  %v98_v28 = vld [vmem:[%s501_s2] sm:$0xff]  ;;  %s273_s18 = sshll.u32 %s386_s17, 4  ;;  %s274_s18 = int_to_ptr.vmem [resolvable:$true] %s273_s18 }
   0x6   :  { %v331_v16 = vunpack.c.l.bf16 %v345_v15  ;;  %v332_v17 = vunpack.c.h.bf16 %v345_v15  ;;  %v335_v19 = vunpack.c.l.bf16 %v346_v18  ;;  %v336_v20 = vunpack.c.h.bf16 %v346_v18  ;;  %v100_v24 = vld [vmem:[%s501_s2 + $0x10] sm:$0xff]  ;;  %v101_v26 = vld [vmem:[%s501_s2 + $0x18] sm:$0xff]  ;;  %104 = vperm.xlu2 %353, %v98_v28   ;;  %v99_v30 = vld [vmem:[%s501_s2 + $0x8] sm:$0xff] }
   0x7   :  { %v339_v22 = vunpack.c.l.bf16 %v347_v21  ;;  %v340_v23 = vunpack.c.h.bf16 %v347_v21  ;;  %114 = vperm.xlu1 %352, %v100_v24   ;;  %v174_v27 = vld [vmem:[%s503_s4 + $0x10] sm:$0xff]  ;;  %v172_v31 = vld [vmem:[%s503_s4] sm:$0xff]  ;;  %v175_v35 = vld [vmem:[%s503_s4 + $0x18] sm:$0xff]  ;;  %vm206_vm1 = vcmask 261120   ;;  %v260_v21 = vstv %s505_s6 }
   0x8   :  { %v305_v34 = vld [vmem:[%s500_s1] sm:$0xff]  ;;  %v173_v36 = vld [vmem:[%s503_s4 + $0x8] sm:$0xff] }
   0x9   :  { %v306_v37 = vld [vmem:[%s500_s1 + $0x8] sm:$0xff]  ;;  %v307_v60 = vld [vmem:[%s502_s3] sm:$0xff] }
   0xa   :  { %v308_v61 = vld [vmem:[%s502_s3 + $0x8] sm:$0xff] }
   0xc   :  { %62 = vxpose.xlu0.b32.cont [2/16] (narrow) %v312_v2, 16 }
   0xe   :  { %109 = vperm.xlu2 %353, %v99_v30  }
   0xf   :  { %119 = vperm.xlu1 %352, %v101_v26  }
  0x14   :  { %63 = vxpose.xlu0.b32.cont [3/16] (narrow) %v315_v4, 16 }
  0x16   :  { %193 = vperm.xlu2 %353, %v175_v35  }
  0x17   :  { %188 = vperm.xlu1 %352, %v174_v27  }
  0x1c   :  { %64 = vxpose.xlu0.b32.cont [4/16] (narrow) %v316_v5, 16 }
  0x1e   :  { %183 = vperm.xlu2 %353, %v173_v36  }
  0x1f   :  { %178 = vperm.xlu1 %352, %v172_v31  }
  0x24   :  { %65 = vxpose.xlu0.b32.cont [5/16] (narrow) %v319_v7, 16 }
  0x2c   :  { %66 = vxpose.xlu0.b32.cont [6/16] (narrow) %v320_v8, 16 }
  0x34   :  { %67 = vxpose.xlu0.b32.cont [7/16] (narrow) %v323_v10, 16 }
  0x3c   :  { %68 = vxpose.xlu0.b32.cont [8/16] (narrow) %v324_v11, 16 }
  0x44   :  { %69 = vxpose.xlu0.b32.cont [9/16] (narrow) %v327_v13, 16 }
  0x4c   :  { %70 = vxpose.xlu0.b32.cont [10/16] (narrow) %v328_v14, 16 }
  0x54   :  { %71 = vxpose.xlu0.b32.cont [11/16] (narrow) %v331_v16, 16 }
  0x5c   :  { %72 = vxpose.xlu0.b32.cont [12/16] (narrow) %v332_v17, 16 }
  0x60   :  { %v105_v40 = vpop.permute.xlu2 %104 }
  0x64   :  { %73 = vxpose.xlu0.b32.cont [13/16] (narrow) %v335_v19, 16 }
  0x68   :  { %v110_v44 = vpop.permute.xlu2 %109 }
  0x6c   :  { %74 = vxpose.xlu0.b32.cont [14/16] (narrow) %v336_v20, 16  ;;  %v240_v20 = vld [vmem:[%s504_s5] sm:$0xf]  ;;  %s275_s5 = sshll.u32 %s506_s7, 4  ;;  %s276_s5 = int_to_ptr.hbm [resolvable:$true] %s275_s5 }
  0x70   :  { %v194_v63 = vpop.permute.xlu2 %193 }
  0x74   :  { %75 = vxpose.xlu0.b32.cont [15/16] (narrow) %v339_v22, 16 }
  0x78   :  { %v184_v4 = vpop.permute.xlu2 %183 }
  0x79   :  { %v115_v41 = vpop.permute.xlu1 %114 }
  0x7c   :  { %76 = vxpose.xlu0.b32.end [16/16] (narrow) %v340_v23, 16 }
  0x81   :  { %v120_v46 = vpop.permute.xlu1 %119 }
  0x89   :  { %v189_v0 = vpop.permute.xlu1 %188 }
  0x91   :  { %v179_v6 = vpop.permute.xlu1 %178 }
  0xa8   :  { %v77_v29 = vpop.trf.xlu0 }
  0xb0   :  { %v78_v32 = vpop.trf.xlu0 }
  0xb1   :  { %v93_v33 = vpack.c.bf16 %v78_v32, %v77_v29 }
  0xb3   :  { %146 = vmatpush.bf16.msra.mxu0 %v93_v33 }
  0xb6   :  { %292 = vmatmul.msk.bf16.vlgmr.msra.gmra.mxu0 %vm132_vm0, %v305_v34 }
  0xc6   :  { %293 = vmatmul.msk.bf16.gmra.mxu0 %vm132_vm0, %v306_v37 }
  0xe3   :  { %354 = vset.pattern.permute.xlu0 %v385_v25 }
 0x133   :  { %v148_v38 = vpop.f32.mrf.mxu0 }
 0x134   :  { %v149_v48 = vadd.f32 %v148_v38, %v105_v40 }
 0x136   :  { %v158_v53 = vmax.f32 %v149_v48, 0.0 }
 0x138   :  { %v162_v58 = vmin.f32 %v158_v53, 6.0 }
 0x13b   :  { %v150_v39 = vpop.f32.mrf.mxu0 }
 0x13c   :  { %v151_v45 = vadd.f32 %v150_v39, %v110_v44 }
 0x13e   :  { %v159_v51 = vmax.f32 %v151_v45, 0.0 }
 0x140   :  { %v163_v56 = vmin.f32 %v159_v51, 6.0 }
 0x142   :  { %v170_v59 = vpack.c.bf16 %v163_v56, %v162_v58 }
 0x143   :  { %v153_v42 = vpop.f32.mrf.mxu0 }
 0x144   :  { %v154_v43 = vadd.f32 %v153_v42, %v115_v41 }
 0x146   :  { %v160_v49 = vmax.f32 %v154_v43, 0.0 }
 0x148   :  { %v164_v54 = vmin.f32 %v160_v49, 6.0 }
 0x14b   :  { %v155_v47 = vpop.f32.mrf.mxu0 }
 0x14c   :  { %v156_v50 = vadd.f32 %v155_v47, %v120_v46 }
 0x14e   :  { %v161_v52 = vmax.f32 %v156_v50, 0.0 }
 0x150   :  { %v165_v55 = vmin.f32 %v161_v52, 6.0 }
 0x152   :  { %v171_v57 = vpack.c.bf16 %v165_v55, %v164_v54 }
 0x154   :  { %219 = vmatpush.bf16.msra.mxu1 %v171_v57  ;;  %348 = vmatpush.bf16.msra.mxu3 %v171_v57 }
 0x158   :  { %220 = vmatpush.bf16.msra.mxu1 %v170_v59  ;;  %349 = vmatpush.bf16.msra.mxu3 %v170_v59 }
 0x15b   :  { %302 = vmatmul.msk.bf16.vlgmr.msra.gmra.mxu1 %vm206_vm1, %v307_v60  ;;  %303 = vmatmul.msk.bf16.vlgmr.msra.gmra.mxu3 %vm206_vm1, %v308_v61 }
 0x1d8   :  { %v222_v62 = vpop.f32.mrf.mxu1 }
 0x1d9   :  { %v223_v8 = vadd.f32 %v222_v62, %v179_v6 }
 0x1db   :  { %v232_v13 = vmax.f32 %v223_v8, 0.0 }
 0x1dd   :  { %v236_v18 = vmin.f32 %v232_v13, 6.0 }
 0x1de   :  { %v227_v1 = vpop.f32.mrf.mxu3 }
 0x1df   :  { %v228_v3 = vadd.f32 %v227_v1, %v189_v0 }
 0x1e0   :  { %v224_v2 = vpop.f32.mrf.mxu1 }
 0x1e1   :  { %v225_v5 = vadd.f32 %v224_v2, %v184_v4  ;;  %v234_v9 = vmax.f32 %v228_v3, 0.0 }
 0x1e3   :  { %v233_v11 = vmax.f32 %v225_v5, 0.0  ;;  %v238_v14 = vmin.f32 %v234_v9, 6.0 }
 0x1e5   :  { %v237_v16 = vmin.f32 %v233_v11, 6.0 }
 0x1e6   :  { %v229_v7 = vpop.f32.mrf.mxu3 }
 0x1e7   :  { %v230_v10 = vadd.f32 %v229_v7, %v194_v63  ;;  %v241_v19 = vpack.c.bf16 %v237_v16, %v236_v18 }
 0x1e9   :  { %v235_v12 = vmax.f32 %v230_v10, 0.0 }
 0x1eb   :  { %v239_v15 = vmin.f32 %v235_v12, 6.0 }
 0x1ed   :  { %v242_v17 = vpack.c.bf16 %v239_v15, %v238_v14 }
 0x1ef   :  { %252 = vmatpush.bf16.msra.mxu2 %v242_v17 }
 0x1f3   :  { %253 = vmatpush.bf16.msra.mxu2 %v241_v19 }
 0x1f6   :  { %304 = vmatmul.msk.bf16.vlgmr.msra.gmra.mxu2 %vm206_vm1, %v240_v20 }
 0x279   :  { %v255_v22 = vpop.f32.mrf.mxu2 }
 0x27a   :  { %v261_v23 = vadd.f32 %v260_v21, %v255_v22 }
 0x27c   :  { %v262_v24 = vsub.f32 0.0, %v261_v23 }
 0x27e   :  { %v263_v25 = vmul.f32 1.442695, %v262_v24 }
 0x280   :  { %355 = vpow2.f32 %v263_v25 }
 0x281   :  { %v257_v26 = vpop.f32.mrf.mxu2 }
 0x286   :  { %v356_v27 = vpop.eup %355 }
 0x287   :  { %v265_v28 = vadd.f32 1.0, %v356_v27 }
 0x289   :  { %357 = vrcp.f32 %v265_v28 }
 0x28f   :  { %v358_v29 = vpop.eup %357 }
 0x290   :  { %267 = vst [vmem:[#allocation3] sm:$0x1] %v358_v29 }
 0x291   :  { %278 = dma.vmem_to_hbm [thread:$0]  %s274_s18, 16, %s276_s5, [#allocation4]  }
 0x292   :  { %383 = dma.done.wait [#allocation4], 16  }
 0x293   :  { %384 = vsyncadd [#allocation4], 4294967280 }
 0x294   :  { %283 = vsyncpa [#allocation4], 1 }

</bundles_post_ra>
